<compile_context>
chip_gen: v7x
topology: tpu7x:2x2x1
jax: 0.10.0
libtpu: 0.0.40
codegen_flags: <defaults>
</compile_context>

<pallas_src>
import jax
import jax.numpy as jnp
from jax.experimental import pallas as pl
from jax.experimental.pallas import tpu as pltpu


def _round_up(x, m):
    return ((x + m - 1) // m) * m


_LANE = 128        # intermediate hidden width padded to this (lane-aligned MXU/VPU passes)
_SUBLANE = 8       # batch tiles / packed-K padded to multiples of this
_TB_MAX = 4096     # rows per batch tile; fits the 32 MiB scoped-VMEM budget on all gens
_SMALL_BATCH = 32  # below this a single-step Pallas launch is pure overhead -> pure JAX


def _mlp_kernel(x_ref, w1_ref, b1_ref, w2_ref, b2_ref, o_ref):
    """relu(relu(x @ W1 + b1) @ W2 + b2) for one (TB, hidden) output block.

    x_ref : (TB, k_pad)     packed [observed | uncertainties | 0-pad], f32
    w1_ref: (k_pad, h_pad)  layer-1 weight, zero-padded rows/cols (f32 or bf16)
    b1_ref: (1, h_pad)      layer-1 bias, f32
    w2_ref: (h_pad, hidden) layer-2 weight, zero-padded rows only (f32 or bf16)
    b2_ref: (1, hidden)     layer-2 bias, f32
    o_ref : (TB, hidden)    output at true hidden width (no padded writeback)
    """
    x = x_ref[...]
    # Layer 1 on the MXU (K = k_pad <= 8 is essentially free next to layer 2).
    # Bias added after the dot -> accumulator seeded from the MXU result in one
    # fused VPU pass (no separate broadcast+add passes over (TB, h_pad)).
    h = jnp.dot(x.astype(w1_ref.dtype), w1_ref[...],
                preferred_element_type=jnp.float32) + b1_ref[...]
    h = jnp.maximum(h, 0.0)
    # Layer 2: the real GEMM. Weights may be bf16 (v5e/v6e lever); accumulate f32.
    y = jnp.dot(h.astype(w2_ref.dtype), w2_ref[...],
                preferred_element_type=jnp.float32) + b2_ref[...]
    o_ref[...] = jnp.maximum(y, 0.0).astype(o_ref.dtype)


def recognition_forward(observed_data, uncertainties, prepared):
    """JAX wrapper matching RecognitionNetwork.forward semantics.

    observed_data:  (B, dim) float32
    uncertainties:  (B, dim) float32
    prepared:       output of prepare_params()
    returns:        (B, hidden_dim) float32
    """
    w1, b1, w2, b2 = prepared["w1"], prepared["b1"], prepared["w2"], prepared["b2"]
    k_pad, h_pad = w1.shape
    hidden = w2.shape[1]
    batch, dim = observed_data.shape

    # Pack the two tiny inputs into one (B, k_pad) slab (16-32 B per row) so
    # layer 1 is a single MXU matmul and only one narrow block lane-inflates
    # in VMEM (instead of two).
    x = jnp.concatenate([observed_data, uncertainties], axis=1).astype(jnp.float32)
    if k_pad != 2 * dim:
        x = jnp.pad(x, ((0, 0), (0, k_pad - 2 * dim)))

    if batch < _SMALL_BATCH:
        # One-tile workloads: XLA fusion is already optimal; skip kernel launch.
        h = jnp.maximum(x @ w1.astype(jnp.float32) + b1, 0.0)
        return jnp.maximum(h @ w2.astype(jnp.float32) + b2, 0.0)

    # Batch tile: split into (at least) two grid steps so v7x megacore can shard
    # the "parallel" axis; multiple of 8 sublanes; capped at 4096 rows so the
    # lane-inflated narrow input block (tb*512 B/buffer), the double-buffered
    # output and the h scratch stay well inside the 32 MiB scoped-VMEM budget.
    tb = min(_TB_MAX, max(_SUBLANE, _round_up(-(-batch // 2), _SUBLANE)))
    grid = (pl.cdiv(batch, tb),)

    flops = 2 * batch * k_pad * h_pad + 2 * batch * h_pad * hidden
    bytes_accessed = (4 * (batch * k_pad + batch * hidden)          # streamed acts
                      + w1.dtype.itemsize * k_pad * h_pad           # W1
                      + w2.dtype.itemsize * h_pad * hidden          # W2
                      + 4 * (h_pad + hidden))                       # biases

    out = pl.pallas_call(
        _mlp_kernel,
        out_shape=jax.ShapeDtypeStruct((batch, hidden), jnp.float32),
        grid=grid,
        in_specs=[
            pl.BlockSpec((tb, k_pad), lambda i: (i, 0)),       # packed activations
            pl.BlockSpec((k_pad, h_pad), lambda i: (0, 0)),    # W1 (VMEM-resident)
            pl.BlockSpec((1, h_pad), lambda i: (0, 0)),        # b1
            pl.BlockSpec((h_pad, hidden), lambda i: (0, 0)),   # W2 (rows padded only)
            pl.BlockSpec((1, hidden), lambda i: (0, 0)),       # b2
        ],
        out_specs=pl.BlockSpec((tb, hidden), lambda i: (i, 0)),
        compiler_params=pltpu.CompilerParams(
            # Batch axis is embarrassingly parallel -> megacore-shardable on v7x.
            dimension_semantics=("parallel",),
            # v5e's 16 MiB scoped default would overflow at TB=4096; 32 MiB is
            # safe on every generation (v7x physical is 64 MiB per TC).
            vmem_limit_bytes=32 * 1024 * 1024,
        ),
        cost_estimate=pl.CostEstimate(flops=flops, transcendentals=0,
                                      bytes_accessed=bytes_accessed),
    )(x, w1, b1, w2, b2)
    return out


def init_params(key, dim=2, hidden_dim=64):
    """Params in the PyTorch Linear layout, stored as (in_features, out_features)."""
    k1, k2, k3, k4 = jax.random.split(key, 4)
    in_dim = dim * 2
    s1 = 1.0 / jnp.sqrt(in_dim)
    s2 = 1.0 / jnp.sqrt(hidden_dim)
    return {
        "w1": jax.random.uniform(k1, (in_dim, hidden_dim), jnp.float32, -s1, s1),
        "b1": jax.random.uniform(k2, (hidden_dim,), jnp.float32, -s1, s1),
        "w2": jax.random.uniform(k3, (hidden_dim, hidden_dim), jnp.float32, -s2, s2),
        "b2": jax.random.uniform(k4, (hidden_dim,), jnp.float32, -s2, s2),
    }


def prepare_params(params, dim, weights_dtype=jnp.float32):
    """One-time layout prep for the kernel.

    * W1 is kept whole (wrapper packs the inputs), zero-padded so K is a
      sublane multiple and the hidden width a lane multiple -> aligned MXU operands.
    * W2 only gets zero ROW padding (its K side must match h_pad); the output
      stays at the true hidden width so the kernel writes an unpadded (B, hidden)
      result straight to HBM (no wrapper slice pass).
    * weights_dtype=jnp.bfloat16 is the optional v5e/v6e MXU-rate lever (f32
      accumulation is kept in-kernel); default f32 preserves exact numerics.
    Zero padding keeps all real output columns numerically exact.
    """
    w1, b1, w2, b2 = params["w1"], params["b1"], params["w2"], params["b2"]
    in_dim = 2 * dim
    hidden = w2.shape[1]
    k_pad = _round_up(in_dim, _SUBLANE)
    h_pad = _round_up(hidden, _LANE)
    return {
        "w1": jnp.pad(w1, ((0, k_pad - in_dim), (0, h_pad - hidden))).astype(weights_dtype),
        "b1": jnp.pad(b1, (0, h_pad - hidden)).reshape(1, h_pad).astype(jnp.float32),
        "w2": jnp.pad(w2, ((0, h_pad - hidden), (0, 0))).astype(weights_dtype),
        "b2": b2.reshape(1, hidden).astype(jnp.float32),
    }


def _reference_forward(observed_data, uncertainties, params):
    """Pure-JAX reference mirroring the PyTorch module."""
    x = jnp.concatenate([observed_data, uncertainties], axis=1)
    h = jnp.maximum(x @ params["w1"] + params["b1"], 0.0)
    return jnp.maximum(h @ params["w2"] + params["b2"], 0.0)


if __name__ == "__main__":
    dim = 2
    hidden_dim = 64

    key = jax.random.PRNGKey(0)
    kp, ko, ku = jax.random.split(key, 3)

    params = init_params(kp, dim=dim, hidden_dim=hidden_dim)
    prepared = prepare_params(params, dim)   # f32 weights -> exact numerics

    batch = 256  # big enough for the Pallas path and >= 2 "parallel" grid steps
    observed_data = jax.random.normal(ko, (batch, dim), jnp.float32)
    uncertainties = jax.random.uniform(ku, (batch, dim), jnp.float32, 0.1, 1.0)

    ref = _reference_forward(observed_data, uncertainties, params)

    # Pallas path (grid = (2,), 128-row tiles, unpadded (B, 64) writeback).
    out = jax.block_until_ready(
        recognition_forward(observed_data, uncertainties, prepared))
    assert out.shape == (batch, hidden_dim), out.shape
    assert jnp.allclose(out, ref, atol=1e-5, rtol=1e-5), "Pallas path mismatch"

    # Ragged batch -> partial last tile (Pallas masks out-of-bounds output rows).
    out_ragged = jax.block_until_ready(
        recognition_forward(observed_data[:200], uncertainties[:200], prepared))
    assert jnp.allclose(out_ragged, ref[:200], atol=1e-5, rtol=1e-5), "ragged mismatch"

    # Tiny batch -> pure-JAX fallback (single-step launch would be pure overhead).
    out_small = jax.block_until_ready(
        recognition_forward(observed_data[:8], uncertainties[:8], prepared))
    assert jnp.allclose(out_small, ref[:8], atol=1e-5, rtol=1e-5), "fallback mismatch"

    print("KERNEL_OK")
</pallas_src>

<mosaic_0001>
module attributes {stable_mosaic.version = 11 : i64} {
  func.func @_mlp_kernel(%arg0: i32, %arg1: memref<128x8xf32, #tpu.memory_space<vmem>>, %arg2: memref<8x128xf32, #tpu.memory_space<vmem>>, %arg3: memref<1x128xf32, #tpu.memory_space<vmem>>, %arg4: memref<128x64xf32, #tpu.memory_space<vmem>>, %arg5: memref<1x64xf32, #tpu.memory_space<vmem>>, %arg6: memref<128x64xf32, #tpu.memory_space<vmem>>) attributes {dimension_semantics = [#tpu.dimension_semantics<parallel>], iteration_bounds = array<i64: 2>, scalar_prefetch = 0 : i64, scratch_operands = 0 : i64, tpu.core_type = #tpu.core_type<tc>, window_params = [{transform_indices = @transform_0, window_bounds = array<i64: 128, 8>}, {pipeline_mode = #tpu.pipeline_mode<synchronous>, transform_indices = @transform_1, window_bounds = array<i64: 8, 128>}, {pipeline_mode = #tpu.pipeline_mode<synchronous>, transform_indices = @transform_2, window_bounds = array<i64: 1, 128>}, {pipeline_mode = #tpu.pipeline_mode<synchronous>, transform_indices = @transform_3, window_bounds = array<i64: 128, 64>}, {pipeline_mode = #tpu.pipeline_mode<synchronous>, transform_indices = @transform_4, window_bounds = array<i64: 1, 64>}, {transform_indices = @transform_5, window_bounds = array<i64: 128, 64>}]} {
    %c0 = arith.constant 0 : index
    %c0_0 = arith.constant 0 : index
    %0 = vector.load %arg1[%c0, %c0_0] : memref<128x8xf32, #tpu.memory_space<vmem>>, vector<128x8xf32>
    %c0_1 = arith.constant 0 : index
    %c0_2 = arith.constant 0 : index
    %1 = vector.load %arg2[%c0_1, %c0_2] : memref<8x128xf32, #tpu.memory_space<vmem>>, vector<8x128xf32>
    %cst = arith.constant dense<0.000000e+00> : vector<128x128xf32>
    %2 = tpu.matmul %0, %1, %cst {dimension_numbers = #tpu.dot_dimension_numbers<[1], [0], [0], [1], [0, 0, 1, 1], [], []>} : vector<128x8xf32>, vector<8x128xf32>, vector<128x128xf32> -> vector<128x128xf32>
    %c0_3 = arith.constant 0 : index
    %c0_4 = arith.constant 0 : index
    %3 = vector.load %arg3[%c0_3, %c0_4] : memref<1x128xf32, #tpu.memory_space<vmem>>, vector<1x128xf32>
    %4 = vector.broadcast %3 : vector<1x128xf32> to vector<128x128xf32>
    %5 = arith.addf %2, %4 : vector<128x128xf32>
    %cst_5 = arith.constant 0.000000e+00 : f32
    %6 = vector.broadcast %cst_5 : f32 to vector<128x128xf32>
    %7 = arith.maximumf %5, %6 : vector<128x128xf32>
    %c0_6 = arith.constant 0 : index
    %c0_7 = arith.constant 0 : index
    %8 = vector.load %arg4[%c0_6, %c0_7] : memref<128x64xf32, #tpu.memory_space<vmem>>, vector<128x64xf32>
    %cst_8 = arith.constant dense<0.000000e+00> : vector<128x64xf32>
    %9 = tpu.matmul %7, %8, %cst_8 {dimension_numbers = #tpu.dot_dimension_numbers<[1], [0], [0], [1], [0, 0, 1, 1], [], []>} : vector<128x128xf32>, vector<128x64xf32>, vector<128x64xf32> -> vector<128x64xf32>
    %c0_9 = arith.constant 0 : index
    %c0_10 = arith.constant 0 : index
    %10 = vector.load %arg5[%c0_9, %c0_10] : memref<1x64xf32, #tpu.memory_space<vmem>>, vector<1x64xf32>
    %11 = vector.broadcast %10 : vector<1x64xf32> to vector<128x64xf32>
    %12 = arith.addf %9, %11 : vector<128x64xf32>
    %cst_11 = arith.constant 0.000000e+00 : f32
    %13 = vector.broadcast %cst_11 : f32 to vector<128x64xf32>
    %14 = arith.maximumf %12, %13 : vector<128x64xf32>
    %c0_12 = arith.constant 0 : index
    %c0_13 = arith.constant 0 : index
    %15 = vector.load %arg6[%c0_12, %c0_13] : memref<128x64xf32, #tpu.memory_space<vmem>>, vector<128x64xf32>
    tpu.vector_store %arg6[%c0_12, %c0_13], %14 {strides = array<i32>} : memref<128x64xf32, #tpu.memory_space<vmem>>, vector<128x64xf32>,
    return
  }
  func.func @transform_0(%arg0: i32) -> (i32, i32) {
    %c0_i32 = arith.constant 0 : i32
    %c0_i32_0 = arith.constant 0 : i32
    return %arg0, %c0_i32 : i32, i32
  }
  func.func @transform_1(%arg0: i32) -> (i32, i32) {
    %c0_i32 = arith.constant 0 : i32
    %c0_i32_0 = arith.constant 0 : i32
    %c0_i32_1 = arith.constant 0 : i32
    return %c0_i32, %c0_i32_0 : i32, i32
  }
  func.func @transform_2(%arg0: i32) -> (i32, i32) {
    %c0_i32 = arith.constant 0 : i32
    %c0_i32_0 = arith.constant 0 : i32
    %c0_i32_1 = arith.constant 0 : i32
    return %c0_i32, %c0_i32_0 : i32, i32
  }
  func.func @transform_3(%arg0: i32) -> (i32, i32) {
    %c0_i32 = arith.constant 0 : i32
    %c0_i32_0 = arith.constant 0 : i32
    %c0_i32_1 = arith.constant 0 : i32
    return %c0_i32, %c0_i32_0 : i32, i32
  }
  func.func @transform_4(%arg0: i32) -> (i32, i32) {
    %c0_i32 = arith.constant 0 : i32
    %c0_i32_0 = arith.constant 0 : i32
    %c0_i32_1 = arith.constant 0 : i32
    return %c0_i32, %c0_i32_0 : i32, i32
  }
  func.func @transform_5(%arg0: i32) -> (i32, i32) {
    %c0_i32 = arith.constant 0 : i32
    %c0_i32_0 = arith.constant 0 : i32
    return %arg0, %c0_i32 : i32, i32
  }
}

</mosaic_0001>

<bundles_post_ra>
// kernel: tpu_custom_call.1
= control target key start
LH: loop header
LB: loop body
LE: loop exit
PB: predicated region body
PF: predicated region fallthrough
CT: control target
= control target key end

     0   :  { %s973_s18 = smov 0   ;;  %s1122_s0 = inlined_call_operand.vmem [shape: f32[256,8], index: 0, kind: input, shape index: {}]   ;;  %s1123_s1 = inlined_call_operand.vmem [shape: f32[8,128], index: 1, kind: input, shape index: {}]   ;;  %s1124_s2 = inlined_call_operand.vmem [shape: f32[1,128], index: 2, kind: input, shape index: {}]   ;;  %s1125_s3 = inlined_call_operand.vmem [shape: f32[128,64], index: 3, kind: input, shape index: {}]   ;;  %s1126_s4 = inlined_call_operand.vmem [shape: f32[1,64], index: 4, kind: input, shape index: {}]   ;;  %s1127_s5 = inlined_call_operand.vmem [shape: f32[256,64], index: 5, kind: output, shape index: {}]  }
   0x1 LB: > { %s719_s19 = sadd.s32 4294967295, %s941_s18   ;;  %p723_p0 = scmp.ge.s32.totalorder %s941_s18, 1  ;;  %s941_s18 = sphi %s973_s18, %s15_s18  }
   0x2   : > { %p188_p1 = scmp.lt.s32.totalorder %s941_s18, 3 }
   0x4   : > { %p189_p2 = pnand %p723_p0, %p188_p1 }
   0x5   : > { %v244_v0 = vld [vmem:[%s1123_s1] sm:$0xff] (!%p189_p2)  ;;  %s724_s22 = sshll.u32 (!%p189_p2), %s719_s19, 4  ;;  %v463_v2 = vld [vmem:[%s1125_s3 + $0x8] sm:$0xff] (!%p189_p2)  ;;  %v464_v4 = vld [vmem:[%s1125_s3 + $0x10] sm:$0xff] (!%p189_p2)  ;;  %vm252_vm0 = vcmask (!%p189_p2), 64512   ;;  %vm646_vm1 = vcmask (!%p189_p2), 523264  }
   0x6   : > { %192 = sbr.rel (%p189_p2) target bundleno = 482 (0x1e2), region = 40  ;;  %v462_v1 = vld [vmem:[%s1125_s3] sm:$0xff] (!%p189_p2)  ;;  %797 = vmatprep.subr.mxu0 (!%p189_p2), %v244_v0  ;;  %p217_p3 = scmp.lt.s32.totalorder (!%p189_p2), %s724_s22, 31  ;;  %v465_v5 = vld [vmem:[%s1125_s3 + $0x18] sm:$0xff] (!%p189_p2)  ;;  %v467_v8 = vld [vmem:[%s1125_s3 + $0x28] sm:$0xff] (!%p189_p2) }
   0x7   : > { %v879_v3 = vpack.c.bf16 (!%p189_p2), %v463_v2, %v462_v1  ;;  %798 = vmatpush3.msra.mxu0 (!%p189_p2), %v244_v0  ;;  %v883_v6 = vpack.c.bf16 (!%p189_p2), %v465_v5, %v464_v4  ;;  %v466_v7 = vld [vmem:[%s1125_s3 + $0x20] sm:$0xff] (!%p189_p2)  ;;  %v468_v13 = vld [vmem:[%s1125_s3 + $0x30] sm:$0xff] (!%p189_p2)  ;;  %v469_v14 = vld [vmem:[%s1125_s3 + $0x38] sm:$0xff] (!%p189_p2) }
   0x8   : > { %v887_v12 = vpack.c.bf16 (!%p189_p2), %v467_v8, %v466_v7  ;;  %v891_v17 = vpack.c.bf16 (!%p189_p2), %v469_v14, %v468_v13  ;;  %v470_v18 = vld [vmem:[%s1125_s3 + $0x40] sm:$0xff] (!%p189_p2)  ;;  %v471_v19 = vld [vmem:[%s1125_s3 + $0x48] sm:$0xff] (!%p189_p2)  ;;  %v472_v23 = vld [vmem:[%s1125_s3 + $0x50] sm:$0xff] (!%p189_p2) }
   0x9   : > { %880 = vmatprep.subr.bf16.mxu0 (!%p189_p2), %v879_v3  ;;  %911 = vmatprep.subr.bf16.mxu1 (!%p189_p2), %v879_v3  ;;  %v895_v22 = vpack.c.bf16 (!%p189_p2), %v471_v19, %v470_v18  ;;  %v473_v24 = vld [vmem:[%s1125_s3 + $0x58] sm:$0xff] (!%p189_p2)  ;;  %v474_v28 = vld [vmem:[%s1125_s3 + $0x60] sm:$0xff] (!%p189_p2)  ;;  %v475_v29 = vld [vmem:[%s1125_s3 + $0x68] sm:$0xff] (!%p189_p2) }
   0xa   : > { %919 = vmatpush3.bf16.msra.mxu1 (!%p189_p2), %v879_v3  ;;  %v899_v27 = vpack.c.bf16 (!%p189_p2), %v473_v24, %v472_v23  ;;  %v903_v32 = vpack.c.bf16 (!%p189_p2), %v475_v29, %v474_v28  ;;  %v476_v38 = vld [vmem:[%s1125_s3 + $0x70] sm:$0xff] (!%p189_p2)  ;;  %v477_v39 = vld [vmem:[%s1125_s3 + $0x78] sm:$0xff] (!%p189_p2)  ;;  %v728_v41 = vld [vmem:[%s1124_s2] ss:$0 sm:$0xff] (!%p189_p2) }
   0xb   : > { %912 = vmatprep.subr.bf16.mxu1 (!%p189_p2), %v883_v6  ;;  %v907_v40 = vpack.c.bf16 (!%p189_p2), %v477_v39, %v476_v38 }
   0xd   : > { %s1129_s22 = smov (!%p217_p3, %s724_s22), 31 }
   0xe   : > { %s725_s10 = sshll.u32 %s1129_s22, 3  ;;  %920 = vmatpush3.bf16.msra.mxu1 %v883_v6 }
   0xf   : > { %s1010_s13 = scalar_lea.vmem %s1122_s0, %s725_s10  ;;  %913 = vmatprep.subr.bf16.mxu1 %v887_v12  ;;  %s1085_s19 = scalar_lea.vmem %s1127_s5, %s725_s10 }
  0x10   : > { %v228_v9 = vld [vmem:[%s1010_s13] sm:$0xff]  ;;  %v229_v10 = vld [vmem:[%s1010_s13 + $0x8] sm:$0xff]  ;;  %v230_v11 = vld [vmem:[%s1010_s13 + $0x10] sm:$0xff] }
  0x11   : > { %799 = vmatprep.mubr.msk.f32.mxu0 %vm252_vm0, %v228_v9  ;;  %v231_v15 = vld [vmem:[%s1010_s13 + $0x18] sm:$0xff]  ;;  %v232_v16 = vld [vmem:[%s1010_s13 + $0x20] sm:$0xff]  ;;  %v233_v20 = vld [vmem:[%s1010_s13 + $0x28] sm:$0xff] }
  0x12   : > { %800 = vmatmul.mubr.msk.f32.vlgmr.msra.gmra.mrb[0].mxu0 %vm252_vm0, %v229_v10  ;;  %921 = vmatpush3.bf16.msra.mxu1 %v887_v12  ;;  %v234_v21 = vld [vmem:[%s1010_s13 + $0x30] sm:$0xff]  ;;  %v235_v25 = vld [vmem:[%s1010_s13 + $0x38] sm:$0xff]  ;;  %v236_v26 = vld [vmem:[%s1010_s13 + $0x40] sm:$0xff] }
  0x13   : > { %802 = vmatprep.mubr.msk.f32.mxu0 %vm252_vm0, %v230_v11  ;;  %882 = vmatpush3.bf16.msra.mxu0 %v879_v3  ;;  %v237_v30 = vld [vmem:[%s1010_s13 + $0x48] sm:$0xff]  ;;  %v238_v31 = vld [vmem:[%s1010_s13 + $0x50] sm:$0xff]  ;;  %v239_v33 = vld [vmem:[%s1010_s13 + $0x58] sm:$0xff] }
  0x14   : > { %884 = vmatprep.subr.bf16.mxu0 %v883_v6  ;;  %914 = vmatprep.subr.bf16.mxu1 %v891_v17  ;;  %v240_v34 = vld [vmem:[%s1010_s13 + $0x60] sm:$0xff]  ;;  %v241_v35 = vld [vmem:[%s1010_s13 + $0x68] sm:$0xff]  ;;  %v242_v36 = vld [vmem:[%s1010_s13 + $0x70] sm:$0xff] }
  0x15   : > { %v243_v37 = vld [vmem:[%s1010_s13 + $0x78] sm:$0xff] }
  0x16   : > { %803 = vmatmul.mubr.msk.f32.gmra.mrb[2].mxu0 %vm252_vm0, %v231_v15  ;;  %922 = vmatpush3.bf16.msra.mxu1 %v891_v17 }
  0x17   : > { %805 = vmatprep.mubr.msk.f32.mxu0 %vm252_vm0, %v232_v16  ;;  %886 = vmatpush3.bf16.msra.mxu0 %v883_v6 }
  0x18   : > { %888 = vmatprep.subr.bf16.mxu0 %v887_v12  ;;  %915 = vmatprep.subr.bf16.mxu1 %v895_v22 }
  0x1a   : > { %806 = vmatmul.mubr.msk.f32.gmra.mrb[4].mxu0 %vm252_vm0, %v233_v20  ;;  %923 = vmatpush3.bf16.msra.mxu1 %v895_v22 }
  0x1b   : > { %808 = vmatprep.mubr.msk.f32.mxu0 %vm252_vm0, %v234_v21  ;;  %890 = vmatpush3.bf16.msra.mxu0 %v887_v12 }
  0x1c   : > { %892 = vmatprep.subr.bf16.mxu0 %v891_v17  ;;  %916 = vmatprep.subr.bf16.mxu1 %v899_v27 }
  0x1e   : > { %809 = vmatmul.mubr.msk.f32.gmra.mrb[6].mxu0 %vm252_vm0, %v235_v25  ;;  %924 = vmatpush3.bf16.msra.mxu1 %v899_v27 }
  0x1f   : > { %811 = vmatprep.mubr.msk.f32.mxu0 %vm252_vm0, %v236_v26  ;;  %894 = vmatpush3.bf16.msra.mxu0 %v891_v17  ;;  %v745_v26 = vld [vmem:[%s1126_s4] ss:$0 sm:$0xff] }
  0x20   : > { %896 = vmatprep.subr.bf16.mxu0 %v895_v22  ;;  %917 = vmatprep.subr.bf16.mxu1 %v903_v32 }
  0x22   : > { %812 = vmatmul.mubr.msk.f32.gmra.mrb[8].mxu0 %vm252_vm0, %v237_v30  ;;  %925 = vmatpush3.bf16.msra.mxu1 %v903_v32 }
  0x23   : > { %814 = vmatprep.mubr.msk.f32.mxu0 %vm252_vm0, %v238_v31  ;;  %898 = vmatpush3.bf16.msra.mxu0 %v895_v22 }
  0x24   : > { %900 = vmatprep.subr.bf16.mxu0 %v899_v27  ;;  %918 = vmatprep.subr.bf16.mxu1 %v907_v40 }
  0x26   : > { %815 = vmatmul.mubr.msk.f32.gmra.mrb[10].mxu0 %vm252_vm0, %v239_v33  ;;  %926 = vmatpush3.bf16.msra.mxu1 %v907_v40 }
  0x27   : > { %817 = vmatprep.mubr.msk.f32.mxu0 %vm252_vm0, %v240_v34  ;;  %902 = vmatpush3.bf16.msra.mxu0 %v899_v27 }
  0x28   : > { %904 = vmatprep.subr.bf16.mxu0 %v903_v32 }
  0x2a   : > { %818 = vmatmul.mubr.msk.f32.gmra.mrb[12].mxu0 %vm252_vm0, %v241_v35 }
  0x2b   : > { %820 = vmatprep.mubr.msk.f32.mxu0 %vm252_vm0, %v242_v36  ;;  %906 = vmatpush3.bf16.msra.mxu0 %v903_v32 }
  0x2c   : > { %908 = vmatprep.subr.bf16.mxu0 %v907_v40 }
  0x2e   : > { %821 = vmatmul.mubr.msk.f32.gmra.mrb[14].mxu0 %vm252_vm0, %v243_v37 }
  0x2f   : > { %910 = vmatpush3.bf16.msra.mxu0 %v907_v40 }
  0xe5   : > { %v801_v42 = vpop.f32.mrb[0].mxu0 }
  0xe6   : > { %v373_v43 = vadd.f32 %v801_v42, %v728_v41  ;;  %v367_v44 = vpop.f32.mrb[1].mxu0 }
  0xe7   : > { %v368_v45 = vadd.f32 %v728_v41, %v367_v44 }
  0xe8   : > { %v447_v48 = vmax.f32 %v373_v43, 0.0 }
  0xe9   : > { %v446_v46 = vmax.f32 %v368_v45, 0.0  ;;  %v804_v47 = vpop.f32.mrb[2].mxu0 }
  0xea   : > { %v383_v49 = vadd.f32 %v804_v47, %v728_v41  ;;  %v377_v50 = vpop.f32.mrb[3].mxu0 }
  0xeb   : > { %v378_v51 = vadd.f32 %v728_v41, %v377_v50  ;;  %855 = vmatprep.mubr.f32.mxu0 %v446_v46 }
  0xec   : > { %856 = vmatmul.mubr.f32.vlgmr.msra.gmra.mrb[16].mxu0 %v447_v48  ;;  %v449_v54 = vmax.f32 %v383_v49, 0.0 }
  0xed   : > { %v448_v52 = vmax.f32 %v378_v51, 0.0  ;;  %v807_v53 = vpop.f32.mrb[4].mxu0 }
  0xee   : > { %v393_v55 = vadd.f32 %v807_v53, %v728_v41  ;;  %v387_v56 = vpop.f32.mrb[5].mxu0 }
  0xef   : > { %v388_v57 = vadd.f32 %v728_v41, %v387_v56  ;;  %858 = vmatprep.mubr.f32.mxu0 %v448_v52 }
  0xf0   : > { %859 = vmatmul.mubr.f32.gmra.mrb[18].mxu0 %v449_v54  ;;  %v451_v60 = vmax.f32 %v393_v55, 0.0 }
  0xf1   : > { %v450_v58 = vmax.f32 %v388_v57, 0.0  ;;  %v810_v59 = vpop.f32.mrb[6].mxu0 }
  0xf2   : > { %v403_v61 = vadd.f32 %v810_v59, %v728_v41  ;;  %v397_v62 = vpop.f32.mrb[7].mxu0 }
  0xf3   : > { %861 = vmatprep.mubr.f32.mxu0 %v450_v58  ;;  %v398_v63 = vadd.f32 %v728_v41, %v397_v62 }
  0xf4   : > { %862 = vmatmul.mubr.f32.gmra.mrb[20].mxu0 %v451_v60  ;;  %v453_v2 = vmax.f32 %v403_v61, 0.0 }
  0xf5   : > { %v813_v0 = vpop.f32.mrb[8].mxu0  ;;  %v452_v1 = vmax.f32 %v398_v63, 0.0 }
  0xf6   : > { %v413_v3 = vadd.f32 %v813_v0, %v728_v41  ;;  %v407_v4 = vpop.f32.mrb[9].mxu0 }
  0xf7   : > { %v408_v5 = vadd.f32 %v728_v41, %v407_v4  ;;  %864 = vmatprep.mubr.f32.mxu1 %v452_v1 }
  0xf8   : > { %865 = vmatmul.mubr.f32.vlgmr.msra.gmra.mrb[0].mxu1 %v453_v2  ;;  %v455_v8 = vmax.f32 %v413_v3, 0.0 }
  0xf9   : > { %v454_v6 = vmax.f32 %v408_v5, 0.0  ;;  %v816_v7 = vpop.f32.mrb[10].mxu0 }
  0xfa   : > { %v423_v9 = vadd.f32 %v816_v7, %v728_v41  ;;  %v417_v10 = vpop.f32.mrb[11].mxu0 }
  0xfb   : > { %v418_v11 = vadd.f32 %v728_v41, %v417_v10  ;;  %867 = vmatprep.mubr.f32.mxu1 %v454_v6 }
  0xfc   : > { %868 = vmatmul.mubr.f32.gmra.mrb[2].mxu1 %v455_v8  ;;  %v457_v14 = vmax.f32 %v423_v9, 0.0 }
  0xfd   : > { %v456_v12 = vmax.f32 %v418_v11, 0.0  ;;  %v819_v13 = vpop.f32.mrb[12].mxu0 }
  0xfe   : > { %v433_v15 = vadd.f32 %v819_v13, %v728_v41  ;;  %v427_v16 = vpop.f32.mrb[13].mxu0 }
  0xff   : > { %v428_v17 = vadd.f32 %v728_v41, %v427_v16  ;;  %870 = vmatprep.mubr.f32.mxu1 %v456_v12 }
 0x100   : > { %871 = vmatmul.mubr.f32.gmra.mrb[4].mxu1 %v457_v14  ;;  %v459_v20 = vmax.f32 %v433_v15, 0.0 }
 0x101   : > { %v458_v18 = vmax.f32 %v428_v17, 0.0  ;;  %v822_v19 = vpop.f32.mrb[14].mxu0 }
 0x102   : > { %v443_v21 = vadd.f32 %v822_v19, %v728_v41  ;;  %v437_v22 = vpop.f32.mrb[15].mxu0 }
 0x103   : > { %v438_v23 = vadd.f32 %v728_v41, %v437_v22  ;;  %873 = vmatprep.mubr.f32.mxu1 %v458_v18 }
 0x104   : > { %874 = vmatmul.mubr.f32.gmra.mrb[6].mxu1 %v459_v20  ;;  %v461_v25 = vmax.f32 %v443_v21, 0.0 }
 0x105   : > { %v460_v24 = vmax.f32 %v438_v23, 0.0 }
 0x107   : > { %876 = vmatprep.mubr.f32.mxu1 %v460_v24 }
 0x108   : > { %877 = vmatmul.mubr.f32.gmra.mrb[8].mxu1 %v461_v25 }
 0x1bf   : > { %v857_v27 = vpop.f32.mrb[16].mxu0 }
 0x1c0   : > { %v557_v28 = vadd.f32 %v857_v27, %v745_v26  ;;  %v551_v29 = vpop.f32.mrb[17].mxu0 }
 0x1c1   : > { %v552_v30 = vadd.f32 %v745_v26, %v551_v29 }
 0x1c2   : > { %v631_v31 = vmax.f32 %v557_v28, 0.0 }
 0x1c3   : > { %v630_v32 = vmax.f32 %v552_v30, 0.0  ;;  %v860_v33 = vpop.f32.mrb[18].mxu0 }
 0x1c4   : > { %648 = vst.msk [vmem:[%s1085_s19 + $0x8] sm:$0xff] %vm646_vm1, %v631_v31  ;;  %v567_v34 = vadd.f32 %v860_v33, %v745_v26  ;;  %v561_v35 = vpop.f32.mrb[19].mxu0 }
 0x1c5   : > { %647 = vst.msk [vmem:[%s1085_s19] sm:$0xff] %vm646_vm1, %v630_v32  ;;  %v562_v36 = vadd.f32 %v745_v26, %v561_v35 }
 0x1c6   : > { %v633_v37 = vmax.f32 %v567_v34, 0.0 }
 0x1c7   : > { %v632_v38 = vmax.f32 %v562_v36, 0.0  ;;  %v863_v39 = vpop.f32.mrb[20].mxu0 }
 0x1c8   : > { %650 = vst.msk [vmem:[%s1085_s19 + $0x18] sm:$0xff] %vm646_vm1, %v633_v37  ;;  %v577_v40 = vadd.f32 %v863_v39, %v745_v26  ;;  %v571_v41 = vpop.f32.mrb[21].mxu0 }
 0x1c9   : > { %649 = vst.msk [vmem:[%s1085_s19 + $0x10] sm:$0xff] %vm646_vm1, %v632_v38  ;;  %v572_v42 = vadd.f32 %v745_v26, %v571_v41 }
 0x1ca   : > { %v635_v43 = vmax.f32 %v577_v40, 0.0 }
 0x1cb   : > { %v634_v44 = vmax.f32 %v572_v42, 0.0  ;;  %v866_v45 = vpop.f32.mrb[0].mxu1 }
 0x1cc   : > { %652 = vst.msk [vmem:[%s1085_s19 + $0x28] sm:$0xff] %vm646_vm1, %v635_v43  ;;  %v587_v46 = vadd.f32 %v866_v45, %v745_v26  ;;  %v581_v47 = vpop.f32.mrb[1].mxu1 }
 0x1cd   : > { %651 = vst.msk [vmem:[%s1085_s19 + $0x20] sm:$0xff] %vm646_vm1, %v634_v44  ;;  %v582_v48 = vadd.f32 %v745_v26, %v581_v47 }
 0x1ce   : > { %v637_v49 = vmax.f32 %v587_v46, 0.0 }
 0x1cf   : > { %v636_v50 = vmax.f32 %v582_v48, 0.0  ;;  %v869_v51 = vpop.f32.mrb[2].mxu1 }
 0x1d0   : > { %654 = vst.msk [vmem:[%s1085_s19 + $0x38] sm:$0xff] %vm646_vm1, %v637_v49  ;;  %v597_v52 = vadd.f32 %v869_v51, %v745_v26  ;;  %v591_v53 = vpop.f32.mrb[3].mxu1 }
 0x1d1   : > { %653 = vst.msk [vmem:[%s1085_s19 + $0x30] sm:$0xff] %vm646_vm1, %v636_v50  ;;  %v592_v54 = vadd.f32 %v745_v26, %v591_v53 }
 0x1d2   : > { %v639_v55 = vmax.f32 %v597_v52, 0.0 }
 0x1d3   : > { %v638_v56 = vmax.f32 %v592_v54, 0.0  ;;  %v872_v57 = vpop.f32.mrb[4].mxu1 }
 0x1d4   : > { %656 = vst.msk [vmem:[%s1085_s19 + $0x48] sm:$0xff] %vm646_vm1, %v639_v55  ;;  %v607_v58 = vadd.f32 %v872_v57, %v745_v26  ;;  %v601_v59 = vpop.f32.mrb[5].mxu1 }
 0x1d5   : > { %655 = vst.msk [vmem:[%s1085_s19 + $0x40] sm:$0xff] %vm646_vm1, %v638_v56  ;;  %v602_v60 = vadd.f32 %v745_v26, %v601_v59 }
 0x1d6   : > { %v641_v61 = vmax.f32 %v607_v58, 0.0 }
 0x1d7   : > { %v640_v62 = vmax.f32 %v602_v60, 0.0  ;;  %v875_v63 = vpop.f32.mrb[6].mxu1 }
 0x1d8   : > { %658 = vst.msk [vmem:[%s1085_s19 + $0x58] sm:$0xff] %vm646_vm1, %v641_v61  ;;  %v617_v0 = vadd.f32 %v875_v63, %v745_v26  ;;  %v611_v1 = vpop.f32.mrb[7].mxu1 }
 0x1d9   : > { %657 = vst.msk [vmem:[%s1085_s19 + $0x50] sm:$0xff] %vm646_vm1, %v640_v62  ;;  %v612_v2 = vadd.f32 %v745_v26, %v611_v1 }
 0x1da   : > { %v643_v3 = vmax.f32 %v617_v0, 0.0 }
 0x1db   : > { %v642_v4 = vmax.f32 %v612_v2, 0.0  ;;  %v878_v5 = vpop.f32.mrb[8].mxu1 }
 0x1dc   : > { %660 = vst.msk [vmem:[%s1085_s19 + $0x68] sm:$0xff] %vm646_vm1, %v643_v3  ;;  %v627_v6 = vadd.f32 %v878_v5, %v745_v26  ;;  %v621_v7 = vpop.f32.mrb[9].mxu1 }
 0x1dd   : > { %659 = vst.msk [vmem:[%s1085_s19 + $0x60] sm:$0xff] %vm646_vm1, %v642_v4  ;;  %v622_v8 = vadd.f32 %v745_v26, %v621_v7 }
 0x1de   : > { %v645_v9 = vmax.f32 %v627_v6, 0.0 }
 0x1df   : > { %v644_v10 = vmax.f32 %v622_v8, 0.0 }
 0x1e0   : > { %662 = vst.msk [vmem:[%s1085_s19 + $0x78] sm:$0xff] %vm646_vm1, %v645_v9 }
 0x1e1   : > { %661 = vst.msk [vmem:[%s1085_s19 + $0x70] sm:$0xff] %vm646_vm1, %v644_v10 }
 0x1e2 PF: > { %s15_s18 = sadd.s32 1, %s941_s18  }
 0x1e3   : > { %p12_p4 = scmp.ge.s32.totalorder %s15_s18, 4  }
 0x1e5   :  { %14 = sbr.rel (!%p12_p4) target bundleno = 1 (0x1), region = 70 }

</bundles_post_ra>
